<compile_context>
chip_gen: v5e
topology: v5e:2x2
jax: 0.10.0
libtpu: 0.0.40
codegen_flags: <defaults>
</compile_context>

<pallas_src>
import functools

import jax
import jax.numpy as jnp
from jax import lax
from jax.experimental import pallas as pl
from jax.experimental.pallas import tpu as pltpu


def _adain_kernel(x_ref, wb_ref, o_ref, *, eps, inv_hw):
    # x_ref: (tc, HW) block -> each row is one (b, c) instance.
    # wb_ref: (tc, 2) block -> column 0 = weight, column 1 = bias.
    x = x_ref[...].astype(jnp.float32)
    wb = wb_ref[...].astype(jnp.float32)

    # One-pass statistics: two independent row reductions (better ILP than
    # reduce -> subtract -> reduce).
    s1 = jnp.sum(x, axis=-1, keepdims=True)            # (tc, 1)
    s2 = jnp.sum(x * x, axis=-1, keepdims=True)        # (tc, 1)
    mean = s1 * inv_hw
    var = jnp.maximum(s2 * inv_hw - mean * mean, 0.0)  # biased variance
    inv_std = lax.rsqrt(var + eps)

    w = wb[:, 0:1]                                     # (tc, 1)
    b = wb[:, 1:2]                                     # (tc, 1)

    # Fused affine: only 2 per-element VALU ops on the big tile.
    scale = inv_std * w                                # (tc, 1)
    shift = b - mean * scale                           # (tc, 1)
    o_ref[...] = (x * scale + shift).astype(o_ref.dtype)


def adaptive_instance_norm_2d(x, weight, bias, *, eps=1e-5):
    """AdaIN forward.

    Args:
      x:      (B, C, H, W) array.
      weight: (B*C,) affine scale (assigned externally in the PyTorch module).
      bias:   (B*C,) affine shift.
    Returns:
      (B, C, H, W) array, same dtype as x.
    """
    B, C, H, W = x.shape
    BC, HW = B * C, H * W

    x2d = x.reshape(BC, HW)
    # Pack weight/bias into a single (BC, 2) f32 operand -> one small DMA
    # per grid step instead of two.
    wb = jnp.stack(
        [weight.astype(jnp.float32), bias.astype(jnp.float32)], axis=-1
    )  # (BC, 2)

    itemsize = jnp.dtype(x.dtype).itemsize
    # Sublane packing: 8 rows for f32, 16 for bf16, 32 for int8/fp8.
    sublane = max(8, 32 // itemsize)

    # Tile sizing: ~6 (tc, HW) f32-sized copies can be live at once
    # (double-buffered in + out + in-kernel temps). Budget ~4 MiB per tile
    # => ~24 MiB peak, safely under v7x's 64 MiB physical VMEM and the
    # explicit scoped limit below.
    per_tile_budget_bytes = 4 * 1024 * 1024
    tc = max(sublane, (per_tile_budget_bytes // (HW * itemsize)) // sublane * sublane)

    bc_pad = pl.cdiv(BC, sublane) * sublane
    tc = min(tc, bc_pad)
    # Keep >= 2 grid steps when there is enough work, so the DMA pipeline and
    # megacore sharding (dimension_semantics=('parallel',)) have something
    # to split.
    if bc_pad > sublane:
        tc = min(tc, pl.cdiv(pl.cdiv(BC, 2), sublane) * sublane)

    grid = (pl.cdiv(BC, tc),)

    kernel = functools.partial(
        _adain_kernel, eps=float(eps), inv_hw=1.0 / float(HW)
    )

    out2d = pl.pallas_call(
        kernel,
        out_shape=jax.ShapeDtypeStruct((BC, HW), x.dtype),
        grid_spec=pltpu.PrefetchScalarGridSpec(
            num_scalar_prefetch=0,
            grid=grid,
            in_specs=[
                pl.BlockSpec((tc, HW), lambda i: (i, 0)),
                pl.BlockSpec((tc, 2), lambda i: (i, 0)),
            ],
            out_specs=pl.BlockSpec((tc, HW), lambda i: (i, 0)),
        ),
        compiler_params=pltpu.CompilerParams(
            dimension_semantics=("parallel",),
            vmem_limit_bytes=48 * 1024 * 1024,
        ),
    )(x2d, wb)

    return out2d.reshape(B, C, H, W)


if __name__ == "__main__":
    B, C, H, W = 2, 4, 16, 16
    num_features = C
    eps = 1e-5

    key = jax.random.PRNGKey(0)
    kx, kw, kb = jax.random.split(key, 3)

    x = jax.random.normal(kx, (B, C, H, W), dtype=jnp.float32)
    # weight / bias are assigned externally in the PyTorch module (shape B*C).
    weight = jax.random.normal(kw, (B * num_features,), dtype=jnp.float32) + 1.0
    bias = jax.random.normal(kb, (B * num_features,), dtype=jnp.float32) * 0.1

    out = adaptive_instance_norm_2d(x, weight, bias, eps=eps)
    out = jax.block_until_ready(out)

    # Pure-JAX reference check (instance norm with biased variance + affine).
    xr = x.reshape(B * C, H * W).astype(jnp.float32)
    mean = xr.mean(axis=-1, keepdims=True)
    var = ((xr - mean) ** 2).mean(axis=-1, keepdims=True)
    ref = ((xr - mean) * jax.lax.rsqrt(var + eps)
           * weight[:, None] + bias[:, None]).reshape(B, C, H, W)
    assert jnp.allclose(out, ref, atol=1e-4, rtol=1e-4), "mismatch vs reference"

    print("KERNEL_OK")
</pallas_src>

<mosaic_0001>
module attributes {stable_mosaic.version = 11 : i64} {
  func.func @_adain_kernel(%arg0: i32, %arg1: memref<8x256xf32, #tpu.memory_space<vmem>>, %arg2: memref<8x2xf32, #tpu.memory_space<vmem>>, %arg3: memref<8x256xf32, #tpu.memory_space<vmem>>) attributes {dimension_semantics = [#tpu.dimension_semantics<parallel>], iteration_bounds = array<i64: 1>, scalar_prefetch = 0 : i64, scratch_operands = 0 : i64, tpu.core_type = #tpu.core_type<tc>, window_params = [{transform_indices = @transform_0, window_bounds = array<i64: 8, 256>}, {transform_indices = @transform_1, window_bounds = array<i64: 8, 2>}, {transform_indices = @transform_2, window_bounds = array<i64: 8, 256>}]} {
    %c0 = arith.constant 0 : index
    %c0_0 = arith.constant 0 : index
    %0 = vector.load %arg1[%c0, %c0_0] : memref<8x256xf32, #tpu.memory_space<vmem>>, vector<8x256xf32>
    %c0_1 = arith.constant 0 : index
    %c0_2 = arith.constant 0 : index
    %1 = vector.load %arg2[%c0_1, %c0_2] : memref<8x2xf32, #tpu.memory_space<vmem>>, vector<8x2xf32>
    %cst = arith.constant dense<0.000000e+00> : vector<8xf32>
    %2 = vector.multi_reduction <add>, %0, %cst [1] : vector<8x256xf32> to vector<8xf32>
    %3 = vector.shape_cast %2 : vector<8xf32> to vector<8x1xf32>
    %4 = arith.mulf %0, %0 : vector<8x256xf32>
    %cst_3 = arith.constant dense<0.000000e+00> : vector<8xf32>
    %5 = vector.multi_reduction <add>, %4, %cst_3 [1] : vector<8x256xf32> to vector<8xf32>
    %6 = vector.shape_cast %5 : vector<8xf32> to vector<8x1xf32>
    %cst_4 = arith.constant 3.906250e-03 : f32
    %7 = vector.broadcast %cst_4 : f32 to vector<8x1xf32>
    %8 = arith.mulf %3, %7 : vector<8x1xf32>
    %cst_5 = arith.constant 3.906250e-03 : f32
    %9 = vector.broadcast %cst_5 : f32 to vector<8x1xf32>
    %10 = arith.mulf %6, %9 : vector<8x1xf32>
    %11 = arith.mulf %8, %8 : vector<8x1xf32>
    %12 = arith.subf %10, %11 : vector<8x1xf32>
    %cst_6 = arith.constant 0.000000e+00 : f32
    %13 = vector.broadcast %cst_6 : f32 to vector<8x1xf32>
    %14 = arith.maximumf %12, %13 : vector<8x1xf32>
    %cst_7 = arith.constant 9.99999974E-6 : f32
    %15 = vector.broadcast %cst_7 : f32 to vector<8x1xf32>
    %16 = arith.addf %14, %15 : vector<8x1xf32>
    %17 = math.rsqrt %16 : vector<8x1xf32>
    %18 = vector.extract_strided_slice %1 {offsets = [0, 0], sizes = [8, 1], strides = [1, 1]} : vector<8x2xf32> to vector<8x1xf32>
    %19 = vector.extract_strided_slice %1 {offsets = [0, 1], sizes = [8, 1], strides = [1, 1]} : vector<8x2xf32> to vector<8x1xf32>
    %20 = arith.mulf %17, %18 : vector<8x1xf32>
    %21 = arith.mulf %8, %20 : vector<8x1xf32>
    %22 = arith.subf %19, %21 : vector<8x1xf32>
    %23 = vector.broadcast %20 : vector<8x1xf32> to vector<8x256xf32>
    %24 = arith.mulf %0, %23 : vector<8x256xf32>
    %25 = vector.broadcast %22 : vector<8x1xf32> to vector<8x256xf32>
    %26 = arith.addf %24, %25 : vector<8x256xf32>
    %c0_8 = arith.constant 0 : index
    %c0_9 = arith.constant 0 : index
    %27 = vector.load %arg3[%c0_8, %c0_9] : memref<8x256xf32, #tpu.memory_space<vmem>>, vector<8x256xf32>
    tpu.vector_store %arg3[%c0_8, %c0_9], %26 {strides = array<i32>} : memref<8x256xf32, #tpu.memory_space<vmem>>, vector<8x256xf32>,
    return
  }
  func.func @transform_0(%arg0: i32) -> (i32, i32) {
    %c0_i32 = arith.constant 0 : i32
    %c0_i32_0 = arith.constant 0 : i32
    return %arg0, %c0_i32 : i32, i32
  }
  func.func @transform_1(%arg0: i32) -> (i32, i32) {
    %c0_i32 = arith.constant 0 : i32
    %c0_i32_0 = arith.constant 0 : i32
    return %arg0, %c0_i32 : i32, i32
  }
  func.func @transform_2(%arg0: i32) -> (i32, i32) {
    %c0_i32 = arith.constant 0 : i32
    %c0_i32_0 = arith.constant 0 : i32
    return %arg0, %c0_i32 : i32, i32
  }
}

</mosaic_0001>

<bundles_post_ra>
// kernel: tpu_custom_call.1
= control target key start
LH: loop header
LB: loop body
LE: loop exit
PB: predicated region body
PF: predicated region fallthrough
CT: control target
= control target key end

     0   :  { %7 = vsyncpa [#allocation3], 0  ;;  %s184_s0 = inlined_call_operand.hbm [shape: f32[8,256], index: 0, kind: input, shape index: {}]   ;;  %s185_s1 = inlined_call_operand.vmem [shape: f32[8,2], index: 1, kind: input, shape index: {}]   ;;  %s186_s2 = inlined_call_operand.hbm [shape: f32[8,256], index: 2, kind: output, shape index: {}]  }
   0x1   :  { %8 = vsyncpa [#allocation4], 0  ;;  %s14_s11 = sshll.u32 %s184_s0, 4  ;;  %s155_s12 = smov [#allocation2]   ;;  %s15_s11 = int_to_ptr.hbm [resolvable:$true] %s14_s11 }
   0x2   :  { %s16_s13 = sshll.u32 %s155_s12, 4  ;;  %s17_s13 = int_to_ptr.vmem [resolvable:$true] %s16_s13 }
   0x3   :  { %19 = dma.hbm_to_vmem [thread:$0]  %s15_s11, 256, %s17_s13, [#allocation3]  }
   0x4   :  { %151 = dma.done.wait [#allocation3], 256  }
   0x5   :  { %152 = vsyncadd [#allocation3], 4294967040  ;;  %v26_v0 = vld [vmem:[#allocation2] sm:$0xff]  ;;  %v27_v1 = vld [vmem:[#allocation2 + $0x8] sm:$0xff]  ;;  %v156_v9 = vmov 0   ;;  %s157_s15 = smov 1  }
   0x6   :  { %v29_v2 = vadd.f32 %v27_v1, %v26_v0  ;;  %v32_v3 = vmul.f32 %v26_v0, %v26_v0  ;;  %v33_v4 = vmul.f32 %v27_v1, %v27_v1  ;;  %98 = vset.pattern.permute.xlu1 %v156_v9  ;;  %v28_v20 = vld [vmem:[%s185_s1] sm:$0xff]  ;;  %v158_v25 = vmov 1   ;;  %s159_s16 = smov [#allocation5]   ;;  %s83_s19 = sshll.u32 %s186_s2, 4  ;;  %s84_s19 = int_to_ptr.hbm [resolvable:$true] %s83_s19 }
   0x7   :  { %99 = vset.pattern.permute.xlu2 %v158_v25  ;;  %100 = vset.pattern.permute.xlu0 %v158_v25  ;;  %s81_s17 = sshll.u32 %s159_s16, 4  ;;  %s82_s17 = int_to_ptr.vmem [resolvable:$true] %s81_s17 }
   0x8   :  { %30 = vadd.xlane.f32.xlu0 %v29_v2  ;;  %v34_v5 = vadd.f32 %v33_v4, %v32_v3 }
  0x10   :  { %35 = vadd.xlane.f32.xlu0 %v34_v5 }
  0x7b   :  { %v31_v6 = vpop.xlane.xlu0 %30 }
  0x7c   :  { %v37_v7 = vmul.f32 0.00390625, %v31_v6 }
  0x7e   :  { %v39_v10 = vmul.f32 %v37_v7, %v37_v7 }
  0x83   :  { %v36_v8 = vpop.xlane.xlu0 %35 }
  0x84   :  { %v38_v11 = vmul.f32 0.00390625, %v36_v8 }
  0x86   :  { %v40_v12 = vsub.f32 %v38_v11, %v39_v10 }
  0x88   :  { %v41_v13 = vmax.f32 %v40_v12, 0.0 }
  0x8a   :  { %v42_v14 = vadd.f32 1e-05, %v41_v13 }
  0x8c   :  { %101 = vrsqrt.f32 %v42_v14  ;;  %vm49_vm1 = vweird.f32 %v42_v14 }
  0x92   :  { %v102_v15 = vpop.eup %101 }
  0x93   :  { %v44_v16 = vmul.f32 %v102_v15, %v42_v14  ;;  %vm50_vm0 = vweird.f32 %v102_v15 }
  0x94   :  { %vm51_vm2 = vmor %vm49_vm1, %vm50_vm0 }
  0x95   :  { %v45_v17 = vmul.f32 %v102_v15, %v44_v16 }
  0x97   :  { %v46_v18 = vmul.f32 0.5, %v45_v17 }
  0x99   :  { %v47_v19 = vsub.f32 1.5, %v46_v18 }
  0x9b   :  { %v48_v21 = vmul.f32 %v102_v15, %v47_v19 }
  0x9d   :  { %v52_v22 = vsel %vm51_vm2, %v102_v15, %v48_v21 }
  0x9e   :  { %v53_v23 = vmul.f32 %v52_v22, %v28_v20 }
  0xa0   :  { %v54_v24 = vmul.f32 %v53_v23, %v37_v7 }
  0xa2   :  { %56 = vrot.lane.b32.xlu1 %v54_v24, %s157_s15 }
  0xaa   :  { %62 = vperm.xlu1 %98, %v53_v23  }
 0x114   :  { %v57_v26 = vpop.permute.xlu1 %56 }
 0x115   :  { %v59_v27 = vsub.f32 %v28_v20, %v57_v26 }
 0x117   :  { %69 = vperm.xlu2 %99, %v59_v27  }
 0x11c   :  { %v63_v28 = vpop.permute.xlu1 %62 }
 0x11d   :  { %v65_v29 = vmul.f32 %v63_v28, %v26_v0  ;;  %v66_v30 = vmul.f32 %v63_v28, %v27_v1 }
 0x171   :  { %v70_v31 = vpop.permute.xlu2 %69 }
 0x172   :  { %v72_v32 = vadd.f32 %v70_v31, %v65_v29  ;;  %v73_v33 = vadd.f32 %v70_v31, %v66_v30 }
 0x174   :  { %74 = vst [vmem:[#allocation5] sm:$0xff] %v72_v32 }
 0x175   :  { %75 = vst [vmem:[#allocation5 + $0x8] sm:$0xff] %v73_v33 }
 0x176   :  { %86 = dma.vmem_to_hbm [thread:$0]  %s82_s17, 256, %s84_s19, [#allocation4]  }
 0x177   :  { %153 = dma.done.wait [#allocation4], 256  }
 0x178   :  { %154 = vsyncadd [#allocation4], 4294967040 }
 0x179   :  { %91 = vsyncpa [#allocation3], 1 }
 0x17a   :  { %92 = vsyncpa [#allocation4], 1 }

</bundles_post_ra>
